<compile_context>
chip_gen: v7x
topology: tpu7x:2x2x1
jax: 0.10.0
libtpu: 0.0.40
codegen_flags: <defaults>
</compile_context>

<pallas_src>
import functools
import math

import jax
import jax.numpy as jnp
from jax.experimental import pallas as pl
from jax.experimental.pallas import tpu as pltpu


def _round_up(x, m):
    return (x + m - 1) // m * m


def _pick_tm(n_pad8, block_rows):
    """Largest multiple-of-8 row tile that divides n_pad8, <= block_rows,
    and yields >= 2 grid steps when n_pad8 >= 16 (v7x has 2 TensorCores)."""
    cap = min(block_rows, n_pad8)
    if n_pad8 >= 16:
        cap = min(cap, n_pad8 // 2)
    cap = max(8, cap - cap % 8)
    for tm in range(cap, 7, -8):
        if n_pad8 % tm == 0:
            return tm
    return 8


# ----------------------------- Pallas kernel -----------------------------

def _timestep_embedder_kernel(t_ref, freqs_ref, w1c_ref, w1s_ref, b1_ref,
                              w2_ref, b2_ref, o_ref):
    # t_ref    : (TM, 1)       f32
    # freqs_ref: (1, half)     f32   (precomputed in wrapper)
    # w1c_ref  : (half, H)     bf16  (W1 rows multiplying cos(args))
    # w1s_ref  : (half, H)     bf16  (W1 rows multiplying sin(args))
    # b1_ref   : (1, H)        f32
    # w2_ref   : (H, H)        bf16
    # b2_ref   : (1, H)        f32
    # o_ref    : (TM, H)       out dtype
    args = t_ref[...] * freqs_ref[...]                       # (TM, half) f32
    cos = jnp.cos(args)
    sin = jnp.sin(args)

    # PyTorch: emb = [cos | sin]; split the K dimension instead of concat:
    #   emb @ W1 = cos @ W1[:half] + sin @ W1[half:]
    h = (jnp.dot(cos.astype(jnp.bfloat16), w1c_ref[...],
                 preferred_element_type=jnp.float32)
         + jnp.dot(sin.astype(jnp.bfloat16), w1s_ref[...],
                   preferred_element_type=jnp.float32)
         + b1_ref[...])
    h = h * jax.nn.sigmoid(h)                                # SiLU, f32
    out = jnp.dot(h.astype(jnp.bfloat16), w2_ref[...],
                  preferred_element_type=jnp.float32) + b2_ref[...]
    o_ref[...] = out.astype(o_ref.dtype)


# ----------------------------- parameter prep -----------------------------

def prepare_params(w1, b1, w2, b2, *, max_period=10000):
    """One-time param preprocessing (module-init time, not per forward)."""
    freq_dim, hidden = w1.shape
    # TODO(synk): the PyTorch odd-dim zero-pad branch (dim % 2 == 1) is dead
    # for the default frequency_embedding_size=256 and is not implemented.
    assert freq_dim % 2 == 0
    half = freq_dim // 2
    freqs = jnp.exp(-math.log(max_period)
                    * jnp.arange(half, dtype=jnp.float32) / half).reshape(1, half)
    return dict(
        freqs=freqs,
        w1c=w1[:half].astype(jnp.bfloat16),
        w1s=w1[half:].astype(jnp.bfloat16),
        b1=b1.reshape(1, hidden).astype(jnp.float32),
        w2=w2.astype(jnp.bfloat16),
        b2=b2.reshape(1, hidden).astype(jnp.float32),
    )


# ----------------------------- forward wrapper -----------------------------

def timestep_embedder(t, params, *, block_rows=512, out_dtype=jnp.float32):
    """TimestepEmbedder.forward: t (N,) -> (N, hidden)."""
    freqs = params["freqs"]
    w1c, w1s = params["w1c"], params["w1s"]
    b1, w2, b2 = params["b1"], params["w2"], params["b2"]
    half = freqs.shape[1]
    hidden = w2.shape[1]

    n = t.shape[0]
    n_pad = _round_up(max(n, 1), 8)
    tm = _pick_tm(n_pad, block_rows)          # tm | n_pad, tm % 8 == 0

    t2 = t.astype(jnp.float32).reshape(n, 1)
    if n_pad != n:
        t2 = jnp.pad(t2, ((0, n_pad - n), (0, 0)))

    out = pl.pallas_call(
        _timestep_embedder_kernel,
        out_shape=jax.ShapeDtypeStruct((n_pad, hidden), out_dtype),
        grid=(n_pad // tm,),
        in_specs=[
            pl.BlockSpec((tm, 1), lambda i: (i, 0)),            # t rows
            pl.BlockSpec((1, half), lambda i: (0, 0)),           # freqs
            pl.BlockSpec((half, hidden), lambda i: (0, 0)),       # W1 (cos half)
            pl.BlockSpec((half, hidden), lambda i: (0, 0)),       # W1 (sin half)
            pl.BlockSpec((1, hidden), lambda i: (0, 0)),          # b1
            pl.BlockSpec((hidden, hidden), lambda i: (0, 0)),     # W2
            pl.BlockSpec((1, hidden), lambda i: (0, 0)),          # b2
        ],
        out_specs=pl.BlockSpec((tm, hidden), lambda i: (i, 0)),
        compiler_params=pltpu.CompilerParams(
            dimension_semantics=("parallel",)),
    )(t2, freqs, w1c, w1s, b1, w2, b2)

    if n_pad != n:
        out = out[:n]
    return out


# ----------------------------- pure-JAX reference -----------------------------

def timestep_embedder_ref(t, w1, b1, w2, b2, max_period=10000):
    freq_dim = w1.shape[0]
    half = freq_dim // 2
    freqs = jnp.exp(-math.log(max_period)
                    * jnp.arange(half, dtype=jnp.float32) / half)
    args = t[:, None].astype(jnp.float32) * freqs[None]
    emb = jnp.concatenate([jnp.cos(args), jnp.sin(args)], axis=-1)
    h = emb @ w1 + b1
    h = h * jax.nn.sigmoid(h)
    return h @ w2 + b2


# ----------------------------- main -----------------------------

if __name__ == "__main__":
    N = 8                 # batch of scalar timesteps
    FREQ = 256            # frequency_embedding_size (module default)
    HIDDEN = 256          # hidden_size (multiple of 128 -> lane-dense output)

    key = jax.random.PRNGKey(0)
    kt, k1, k2, k3, k4 = jax.random.split(key, 5)
    t = jax.random.uniform(kt, (N,), jnp.float32) * 1000.0
    w1 = jax.random.normal(k1, (FREQ, HIDDEN), jnp.float32) / math.sqrt(FREQ)
    b1 = jax.random.normal(k2, (HIDDEN,), jnp.float32) * 0.02
    w2 = jax.random.normal(k3, (HIDDEN, HIDDEN), jnp.float32) / math.sqrt(HIDDEN)
    b2 = jax.random.normal(k4, (HIDDEN,), jnp.float32) * 0.02

    params = jax.tree_util.tree_map(jax.block_until_ready,
                                    prepare_params(w1, b1, w2, b2))

    fwd = jax.jit(functools.partial(timestep_embedder, block_rows=512))
    out = jax.block_until_ready(fwd(t, params))

    assert out.shape == (N, HIDDEN) and out.dtype == jnp.float32

    ref = timestep_embedder_ref(t, w1, b1, w2, b2)
    max_err = float(jnp.max(jnp.abs(out - ref)))
    assert max_err < 5e-2, f"max abs err vs f32 reference: {max_err}"

    print("KERNEL_OK")
</pallas_src>

<mosaic_0001>
module attributes {stable_mosaic.version = 11 : i64} {
  func.func @_timestep_embedder_kernel(%arg0: i32, %arg1: memref<8x1xf32, #tpu.memory_space<vmem>>, %arg2: memref<1x128xf32, #tpu.memory_space<vmem>>, %arg3: memref<128x256xbf16, #tpu.memory_space<vmem>>, %arg4: memref<128x256xbf16, #tpu.memory_space<vmem>>, %arg5: memref<1x256xf32, #tpu.memory_space<vmem>>, %arg6: memref<256x256xbf16, #tpu.memory_space<vmem>>, %arg7: memref<1x256xf32, #tpu.memory_space<vmem>>, %arg8: memref<8x256xf32, #tpu.memory_space<vmem>>) attributes {dimension_semantics = [#tpu.dimension_semantics<parallel>], iteration_bounds = array<i64: 1>, scalar_prefetch = 0 : i64, scratch_operands = 0 : i64, tpu.core_type = #tpu.core_type<tc>, window_params = [{transform_indices = @transform_0, window_bounds = array<i64: 8, 1>}, {pipeline_mode = #tpu.pipeline_mode<synchronous>, transform_indices = @transform_1, window_bounds = array<i64: 1, 128>}, {pipeline_mode = #tpu.pipeline_mode<synchronous>, transform_indices = @transform_2, window_bounds = array<i64: 128, 256>}, {pipeline_mode = #tpu.pipeline_mode<synchronous>, transform_indices = @transform_3, window_bounds = array<i64: 128, 256>}, {pipeline_mode = #tpu.pipeline_mode<synchronous>, transform_indices = @transform_4, window_bounds = array<i64: 1, 256>}, {pipeline_mode = #tpu.pipeline_mode<synchronous>, transform_indices = @transform_5, window_bounds = array<i64: 256, 256>}, {pipeline_mode = #tpu.pipeline_mode<synchronous>, transform_indices = @transform_6, window_bounds = array<i64: 1, 256>}, {transform_indices = @transform_7, window_bounds = array<i64: 8, 256>}]} {
    %c0 = arith.constant 0 : index
    %c0_0 = arith.constant 0 : index
    %0 = vector.load %arg1[%c0, %c0_0] : memref<8x1xf32, #tpu.memory_space<vmem>>, vector<8x1xf32>
    %c0_1 = arith.constant 0 : index
    %c0_2 = arith.constant 0 : index
    %1 = vector.load %arg2[%c0_1, %c0_2] : memref<1x128xf32, #tpu.memory_space<vmem>>, vector<1x128xf32>
    %2 = vector.broadcast %0 : vector<8x1xf32> to vector<8x128xf32>
    %3 = vector.broadcast %1 : vector<1x128xf32> to vector<8x128xf32>
    %4 = arith.mulf %2, %3 : vector<8x128xf32>
    %5 = math.cos %4 : vector<8x128xf32>
    %6 = math.sin %4 : vector<8x128xf32>
    %7 = arith.truncf %5 : vector<8x128xf32> to vector<8x128xbf16>
    %c0_3 = arith.constant 0 : index
    %c0_4 = arith.constant 0 : index
    %8 = vector.load %arg3[%c0_3, %c0_4] : memref<128x256xbf16, #tpu.memory_space<vmem>>, vector<128x256xbf16>
    %cst = arith.constant dense<0.000000e+00> : vector<8x256xf32>
    %9 = tpu.matmul %7, %8, %cst {dimension_numbers = #tpu.dot_dimension_numbers<[1], [0], [0], [1], [0, 0, 1, 1], [], []>} : vector<8x128xbf16>, vector<128x256xbf16>, vector<8x256xf32> -> vector<8x256xf32>
    %10 = arith.truncf %6 : vector<8x128xf32> to vector<8x128xbf16>
    %c0_5 = arith.constant 0 : index
    %c0_6 = arith.constant 0 : index
    %11 = vector.load %arg4[%c0_5, %c0_6] : memref<128x256xbf16, #tpu.memory_space<vmem>>, vector<128x256xbf16>
    %cst_7 = arith.constant dense<0.000000e+00> : vector<8x256xf32>
    %12 = tpu.matmul %10, %11, %cst_7 {dimension_numbers = #tpu.dot_dimension_numbers<[1], [0], [0], [1], [0, 0, 1, 1], [], []>} : vector<8x128xbf16>, vector<128x256xbf16>, vector<8x256xf32> -> vector<8x256xf32>
    %13 = arith.addf %9, %12 : vector<8x256xf32>
    %c0_8 = arith.constant 0 : index
    %c0_9 = arith.constant 0 : index
    %14 = vector.load %arg5[%c0_8, %c0_9] : memref<1x256xf32, #tpu.memory_space<vmem>>, vector<1x256xf32>
    %15 = vector.broadcast %14 : vector<1x256xf32> to vector<8x256xf32>
    %16 = arith.addf %13, %15 : vector<8x256xf32>
    %17 = arith.negf %16 : vector<8x256xf32>
    %18 = math.exp %17 : vector<8x256xf32>
    %cst_10 = arith.constant 1.000000e+00 : f32
    %19 = vector.broadcast %cst_10 : f32 to vector<8x256xf32>
    %20 = arith.addf %19, %18 : vector<8x256xf32>
    %21 = arith.divf %19, %20 : vector<8x256xf32>
    %22 = arith.mulf %16, %21 : vector<8x256xf32>
    %23 = arith.truncf %22 : vector<8x256xf32> to vector<8x256xbf16>
    %c0_11 = arith.constant 0 : index
    %c0_12 = arith.constant 0 : index
    %24 = vector.load %arg6[%c0_11, %c0_12] : memref<256x256xbf16, #tpu.memory_space<vmem>>, vector<256x256xbf16>
    %cst_13 = arith.constant dense<0.000000e+00> : vector<8x256xf32>
    %25 = tpu.matmul %23, %24, %cst_13 {dimension_numbers = #tpu.dot_dimension_numbers<[1], [0], [0], [1], [0, 0, 1, 1], [], []>} : vector<8x256xbf16>, vector<256x256xbf16>, vector<8x256xf32> -> vector<8x256xf32>
    %c0_14 = arith.constant 0 : index
    %c0_15 = arith.constant 0 : index
    %26 = vector.load %arg7[%c0_14, %c0_15] : memref<1x256xf32, #tpu.memory_space<vmem>>, vector<1x256xf32>
    %27 = vector.broadcast %26 : vector<1x256xf32> to vector<8x256xf32>
    %28 = arith.addf %25, %27 : vector<8x256xf32>
    %c0_16 = arith.constant 0 : index
    %c0_17 = arith.constant 0 : index
    %29 = vector.load %arg8[%c0_16, %c0_17] : memref<8x256xf32, #tpu.memory_space<vmem>>, vector<8x256xf32>
    tpu.vector_store %arg8[%c0_16, %c0_17], %28 {strides = array<i32>} : memref<8x256xf32, #tpu.memory_space<vmem>>, vector<8x256xf32>,
    return
  }
  func.func @transform_0(%arg0: i32) -> (i32, i32) {
    %c0_i32 = arith.constant 0 : i32
    %c0_i32_0 = arith.constant 0 : i32
    return %arg0, %c0_i32 : i32, i32
  }
  func.func @transform_1(%arg0: i32) -> (i32, i32) {
    %c0_i32 = arith.constant 0 : i32
    %c0_i32_0 = arith.constant 0 : i32
    %c0_i32_1 = arith.constant 0 : i32
    return %c0_i32, %c0_i32_0 : i32, i32
  }
  func.func @transform_2(%arg0: i32) -> (i32, i32) {
    %c0_i32 = arith.constant 0 : i32
    %c0_i32_0 = arith.constant 0 : i32
    %c0_i32_1 = arith.constant 0 : i32
    return %c0_i32, %c0_i32_0 : i32, i32
  }
  func.func @transform_3(%arg0: i32) -> (i32, i32) {
    %c0_i32 = arith.constant 0 : i32
    %c0_i32_0 = arith.constant 0 : i32
    %c0_i32_1 = arith.constant 0 : i32
    return %c0_i32, %c0_i32_0 : i32, i32
  }
  func.func @transform_4(%arg0: i32) -> (i32, i32) {
    %c0_i32 = arith.constant 0 : i32
    %c0_i32_0 = arith.constant 0 : i32
    %c0_i32_1 = arith.constant 0 : i32
    return %c0_i32, %c0_i32_0 : i32, i32
  }
  func.func @transform_5(%arg0: i32) -> (i32, i32) {
    %c0_i32 = arith.constant 0 : i32
    %c0_i32_0 = arith.constant 0 : i32
    %c0_i32_1 = arith.constant 0 : i32
    return %c0_i32, %c0_i32_0 : i32, i32
  }
  func.func @transform_6(%arg0: i32) -> (i32, i32) {
    %c0_i32 = arith.constant 0 : i32
    %c0_i32_0 = arith.constant 0 : i32
    %c0_i32_1 = arith.constant 0 : i32
    return %c0_i32, %c0_i32_0 : i32, i32
  }
  func.func @transform_7(%arg0: i32) -> (i32, i32) {
    %c0_i32 = arith.constant 0 : i32
    %c0_i32_0 = arith.constant 0 : i32
    return %arg0, %c0_i32 : i32, i32
  }
}

</mosaic_0001>

<bundles_post_ra>
// kernel: timestep_embedder.1
= control target key start
LH: loop header
LB: loop body
LE: loop exit
PB: predicated region body
PF: predicated region fallthrough
CT: control target
= control target key end

     0   :  { %12 = vsyncpa [#allocation3], 0  ;;  %s1311_s0 = inlined_call_operand.vmem [shape: f32[8,1], index: 0, kind: input, shape index: {}]   ;;  %s1312_s1 = inlined_call_operand.vmem [shape: f32[1,128], index: 1, kind: input, shape index: {}]   ;;  %s1313_s2 = inlined_call_operand.hbm [shape: bf16[128,256], index: 2, kind: input, shape index: {}]   ;;  %s1314_s3 = inlined_call_operand.hbm [shape: bf16[128,256], index: 3, kind: input, shape index: {}]   ;;  %s1315_s4 = inlined_call_operand.vmem [shape: f32[1,256], index: 4, kind: input, shape index: {}]   ;;  %s1316_s5 = inlined_call_operand.hbm [shape: bf16[256,256], index: 5, kind: input, shape index: {}]   ;;  %s1317_s6 = inlined_call_operand.vmem [shape: f32[1,256], index: 6, kind: input, shape index: {}]   ;;  %s1318_s7 = inlined_call_operand.hbm [shape: f32[8,256], index: 7, kind: output, shape index: {}]  }
   0x1   :  { %13 = vsyncpa [#allocation6], 0 }
   0x2   :  { %14 = vsyncpa [#allocation4], 0  ;;  %s1154_s24 = smov [#allocation5]   ;;  %s1155_s26 = smov [#allocation2]  }
   0x3   :  { %s36_s25 = sshll.u32 %s1154_s24, 4  ;;  %s24_s27 = sshll.u32 %s1155_s26, 4  ;;  %s37_s25 = int_to_ptr.vmem [resolvable:$true] %s36_s25  ;;  %s1207_s27 = int_to_ptr.vmem [resolvable:$true] %s24_s27 }
   0x4   :  { %s1060_s30 = scalar_lea.hbm %s1314_s3, 2048 }
   0x5   :  { %p1061_p0 = scmp.ne.s32.totalorder %s1314_s3, %s1060_s30  ;;  %p1064_p1 = scmp.lt.u32.totalorder %s1060_s30, %s1314_s3 }
   0x7   :  { %p1066_p2 = pnand %p1064_p1, %p1061_p0 }
   0x9   :  { %1069 = shalt.err (!%p1066_p2)
}
   0xa   :  { %s1070_s12 = scalar_lea.vmem %s37_s25, 2048  ;;  %p1075_p4 = scmp.lt.s32.totalorder %s37_s25, %s37_s25 }
   0xb   :  { %p1071_p3 = scmp.ne.s32.totalorder %s37_s25, %s1070_s12  ;;  %p1076_p5 = scmp.lt.s32.totalorder %s1070_s12, %s1070_s12 }
   0xd   :  { %p1077_p6 = por %p1076_p5, %p1075_p4 }
   0xf   :  { %p1078_p7 = pnand %p1077_p6, %p1071_p3 }
  0x11   :  { %1081 = shalt.err (!%p1078_p7)
}
  0x12   :  { %s1156_s13 = smov 128   ;;  %s1157_s14 = smov 8  }
  0x13   :  { %42 = dma.hbm_to_vmem [thread:$0]  %s1314_s3, 2048, %s37_s25, [#allocation6], %s1156_s13, %s1156_s13, %s1157_s14  }
  0x14   :  { %s1082_s19 = scalar_lea.hbm %s1313_s2, 2048 }
  0x15   :  { %p1083_p8 = scmp.ne.s32.totalorder %s1313_s2, %s1082_s19  ;;  %p1086_p9 = scmp.lt.u32.totalorder %s1082_s19, %s1313_s2 }
  0x17   :  { %p1088_p10 = pnand %p1086_p9, %p1083_p8 }
  0x19   :  { %1091 = shalt.err (!%p1088_p10)
}
  0x1a   :  { %s1092_s24 = scalar_lea.vmem %s1207_s27, 2048  ;;  %p1097_p12 = scmp.lt.s32.totalorder %s1207_s27, %s1207_s27 }
  0x1b   :  { %p1093_p11 = scmp.ne.s32.totalorder %s1207_s27, %s1092_s24  ;;  %p1098_p13 = scmp.lt.s32.totalorder %s1092_s24, %s1092_s24 }
  0x1d   :  { %p1099_p0 = por %p1098_p13, %p1097_p12 }
  0x1f   :  { %p1100_p1 = pnand %p1099_p0, %p1093_p11 }
  0x21   :  { %1103 = shalt.err (!%p1100_p1)
}
  0x22   :  { %30 = dma.hbm_to_vmem [thread:$0]  %s1313_s2, 2048, %s1207_s27, [#allocation3], %s1156_s13, %s1156_s13, %s1157_s14  }
  0x23   :  { %s1158_s26 = smov [#allocation7]   ;;  %s1104_s8 = scalar_lea.hbm %s1316_s5, 4096 }
  0x24   :  { %s50_s28 = sshll.u32 %s1158_s26, 4  ;;  %p1105_p2 = scmp.ne.s32.totalorder %s1316_s5, %s1104_s8  ;;  %s51_s28 = int_to_ptr.vmem [resolvable:$true] %s50_s28 }
  0x25   :  { %p1108_p3 = scmp.lt.u32.totalorder %s1104_s8, %s1316_s5 }
  0x27   :  { %p1110_p4 = pnand %p1108_p3, %p1105_p2 }
  0x29   :  { %1113 = shalt.err (!%p1110_p4)
}
  0x2a   :  { %s1114_s15 = scalar_lea.vmem %s51_s28, 4096  ;;  %p1119_p6 = scmp.lt.s32.totalorder %s51_s28, %s51_s28 }
  0x2b   :  { %p1115_p5 = scmp.ne.s32.totalorder %s51_s28, %s1114_s15  ;;  %p1120_p7 = scmp.lt.s32.totalorder %s1114_s15, %s1114_s15 }
  0x2d   :  { %p1121_p8 = por %p1120_p7, %p1119_p6 }
  0x2f   :  { %p1122_p9 = pnand %p1121_p8, %p1115_p5 }
  0x31   :  { %1125 = shalt.err (!%p1122_p9)
}
  0x32   :  { %56 = dma.hbm_to_vmem [thread:$0]  %s1316_s5, 4096, %s51_s28, [#allocation6], %s1156_s13, %s1156_s13, %s1157_s14  }
  0x33   :  { %1148 = dma.done.wait [#allocation3], 2048  }
  0x34   :  { %1149 = vsyncadd [#allocation3], 4294965248 }
  0x35   :  { %1150 = dma.done.wait [#allocation6], 6144  }
  0x36   :  { %1151 = vsyncadd [#allocation6], 4294961152  ;;  %v1159_v0 = vmov 0   ;;  %v69_v1 = vld [vmem:[%s1311_s0] sm:$0xff]  ;;  %v955_v4 = vld [vmem:[#allocation5 + $0x14] ss:$8 sps:$4 sm:$0xff]  }
  0x37   :  { %951 = vset.pattern.permute.xlu0 %v1159_v0  ;;  %436 = vmatprep.mubr.bf16.mxu1 %v1159_v0  ;;  %v952_v2 = vld [vmem:[#allocation5 + $0x4] ss:$8 sps:$4 sm:$0xff]   ;;  %v954_v3 = vld [vmem:[#allocation5] ss:$8 sps:$4 sm:$0xff]   ;;  %v957_v5 = vld [vmem:[#allocation5 + $0x10] ss:$8 sps:$4 sm:$0xff]  }
  0x38   :  { %73 = vperm.xlu0 %951, %v69_v1   ;;  %404 = vmatprep.subr.bf16.mxu1 %v952_v2  ;;  %v958_v6 = vld [vmem:[#allocation5 + $0x24] ss:$8 sps:$4 sm:$0xff]   ;;  %v960_v7 = vld [vmem:[#allocation5 + $0x20] ss:$8 sps:$4 sm:$0xff]   ;;  %v961_v8 = vld [vmem:[#allocation5 + $0x34] ss:$8 sps:$4 sm:$0xff]  }
  0x39   :  { %405 = vmatpush1.bf16.msra.mxu1 %v954_v3  ;;  %v963_v9 = vld [vmem:[#allocation5 + $0x30] ss:$8 sps:$4 sm:$0xff]   ;;  %v964_v10 = vld [vmem:[#allocation5 + $0x44] ss:$8 sps:$4 sm:$0xff]   ;;  %v966_v11 = vld [vmem:[#allocation5 + $0x40] ss:$8 sps:$4 sm:$0xff]  }
  0x3a   :  { %406 = vmatprep.subr.bf16.mxu1 %v955_v4  ;;  %v967_v12 = vld [vmem:[#allocation5 + $0x54] ss:$8 sps:$4 sm:$0xff]   ;;  %v969_v13 = vld [vmem:[#allocation5 + $0x50] ss:$8 sps:$4 sm:$0xff]   ;;  %v970_v14 = vld [vmem:[#allocation5 + $0x64] ss:$8 sps:$4 sm:$0xff]  }
  0x3b   :  { %v972_v15 = vld [vmem:[#allocation5 + $0x60] ss:$8 sps:$4 sm:$0xff]   ;;  %v973_v16 = vld [vmem:[#allocation5 + $0x74] ss:$8 sps:$4 sm:$0xff]   ;;  %v975_v17 = vld [vmem:[#allocation5 + $0x70] ss:$8 sps:$4 sm:$0xff]  }
  0x3c   :  { %v978_v18 = vld [vmem:[#allocation2 + $0x4] ss:$8 sps:$4 sm:$0xff]   ;;  %v859_v19 = vld [vmem:[%s1312_s1] ss:$0 sm:$0xff]  ;;  %v1160_v32 = vmov 683565275  }
  0x3d   :  { %407 = vmatpush1.bf16.msra.mxu1 %v957_v5  ;;  %v1161_v34 = vmov 2475754826   ;;  %v1162_v37 = vmov 2131351028   ;;  %v1163_v40 = vmov 2102212464  }
  0x3e   :  { %408 = vmatprep.subr.bf16.mxu1 %v958_v6  ;;  %v1164_v43 = vmov 920167782   ;;  %v1165_v46 = vmov 1326507024   ;;  %s1166_s18 = smov [#allocation8]  }
  0x3f   :  { %s849_s19 = sshll.u32 %s1166_s18, 4  ;;  %s850_s19 = int_to_ptr.vmem [resolvable:$true] %s849_s19 }
  0x40   :  { %s1126_s20 = scalar_lea.vmem %s850_s19, 256  ;;  %p1131_p11 = scmp.lt.s32.totalorder %s850_s19, %s850_s19 }
  0x41   :  { %409 = vmatpush1.bf16.msra.mxu1 %v960_v7  ;;  %p1127_p10 = scmp.ne.s32.totalorder %s850_s19, %s1126_s20  ;;  %p1132_p12 = scmp.lt.s32.totalorder %s1126_s20, %s1126_s20 }
  0x42   :  { %410 = vmatprep.subr.bf16.mxu1 %v961_v8 }
  0x43   :  { %p1133_p13 = por %p1132_p12, %p1131_p11 }
  0x45   :  { %411 = vmatpush1.bf16.msra.mxu1 %v963_v9  ;;  %p1134_p0 = pnand %p1133_p13, %p1127_p10 }
  0x46   :  { %412 = vmatprep.subr.bf16.mxu1 %v964_v10 }
  0x49   :  { %413 = vmatpush1.bf16.msra.mxu1 %v966_v11 }
  0x4a   :  { %414 = vmatprep.subr.bf16.mxu1 %v967_v12 }
  0x4d   :  { %415 = vmatpush1.bf16.msra.mxu1 %v969_v13 }
  0x4e   :  { %416 = vmatprep.subr.bf16.mxu1 %v970_v14 }
  0x51   :  { %417 = vmatpush1.bf16.msra.mxu1 %v972_v15 }
  0x52   :  { %418 = vmatprep.subr.bf16.mxu1 %v973_v16 }
  0x55   :  { %419 = vmatpush1.bf16.msra.mxu1 %v975_v17 }
  0x56   :  { %525 = vmatprep.subr.bf16.mxu1 %v978_v18 }
  0xb7   :  { %v74_v20 = vpop.permute.xlu0 %73 }
  0xb8   :  { %v1267_v21 = vmul.f32 %v859_v19, %v74_v20 }
  0xba   :  { %v86_v22 = vand.u32 2139095040, %v1267_v21  ;;  %v83_v26 = vand.u32 2147483647, %v1267_v21  ;;  %vm85_vm7 = vcmp.lt.s32.totalorder %v1267_v21, 0  ;;  %vm175_vm12 = vweird.f32 %v1267_v21 }
  0xbc   :  { %v87_v23 = vshrl.u32 %v86_v22, 23  ;;  %v90_v29 = vand.u32 8388607, %v83_v26  ;;  %vm84_vm8 = vcmp.le.f32.partialorder %v83_v26, 0.7853982 }
  0xbe   :  { %v860_v24 = vadd.s32 4294967169, %v87_v23  ;;  %v91_v48 = vor.u32 8388608, %v90_v29 }
  0xc0   :  { %v93_v25 = vadd.s32 1, %v860_v24  ;;  %v131_v62 = vshll.u32 %v91_v48, 8 }
  0xc2   :  { %vm94_vm0 = vcmp.gt.s32.totalorder %v93_v25, 0 }
  0xc3   :  { %v95_v27 = vsel %vm94_vm0, %v93_v25, 0 }
  0xc4   :  { %v97_v28 = vand.u32 31, %v95_v27  ;;  %v96_v31 = vshrl.u32 %v95_v27, 5 }
  0xc6   :  { %v98_v30 = vsub.s32 32, %v97_v28  ;;  %v100_v33 = vshll.u32 %v1160_v32, %v97_v28  ;;  %v103_v35 = vshll.u32 %v1161_v34, %v97_v28  ;;  %v106_v39 = vshll.u32 %v1162_v37, %v97_v28 }
  0xc7   :  { %v109_v42 = vshll.u32 %v1163_v40, %v97_v28  ;;  %v112_v45 = vshll.u32 %v1164_v43, %v97_v28  ;;  %vm115_vm1 = vcmp.lt.s32.totalorder %v96_v31, 1  ;;  %vm118_vm2 = vcmp.lt.s32.totalorder %v96_v31, 4 }
  0xc8   :  { %v101_v36 = vshrl.u32 %v1161_v34, %v98_v30  ;;  %v104_v38 = vshrl.u32 %v1162_v37, %v98_v30  ;;  %v107_v41 = vshrl.u32 %v1163_v40, %v98_v30  ;;  %v110_v44 = vshrl.u32 %v1164_v43, %v98_v30 }
  0xc9   :  { %v113_v47 = vshrl.u32 %v1165_v46, %v98_v30  ;;  %v99_v57 = vshrl.u32 %v1160_v32, %v98_v30  ;;  %vm117_vm3 = vcmp.lt.s32.totalorder %v96_v31, 3  ;;  %vm116_vm4 = vcmp.lt.s32.totalorder %v96_v31, 2 }
  0xca   :  { %v102_v49 = vor.u32 %v101_v36, %v100_v33  ;;  %v105_v50 = vor.u32 %v104_v38, %v103_v35  ;;  %v108_v51 = vor.u32 %v107_v41, %v106_v39  ;;  %v111_v52 = vor.u32 %v110_v44, %v109_v42 }
  0xcb   :  { %v114_v53 = vor.u32 %v113_v47, %v112_v45 }
  0xcc   :  { %v120_v54 = vsel %vm118_vm2, %v108_v51, 2102212464  ;;  %v123_v55 = vsel %vm115_vm1, %v102_v49, %v105_v50  ;;  %v127_v56 = vsel %vm115_vm1, %v105_v50, %v108_v51  ;;  %v124_v58 = vsel %vm118_vm2, %v111_v52, 920167782 }
  0xcd   :  { %v128_v59 = vsel %vm118_vm2, %v114_v53, 1326507024  ;;  %v125_v60 = vsel %vm117_vm3, %v108_v51, %v124_v58  ;;  %v119_v63 = vsel %vm115_vm1, %v99_v57, %v102_v49  ;;  %v121_v1 = vsel %vm117_vm3, %v105_v50, %v120_v54  ;;  %v976_v50 = vld [vmem:[#allocation2] ss:$8 sps:$4 sm:$0xff]   ;;  %v981_v53 = vld [vmem:[#allocation2 + $0x14] ss:$8 sps:$4 sm:$0xff]  }
  0xce   :  { %v129_v61 = vsel %vm117_vm3, %v111_v52, %v128_v59  ;;  %v126_v2 = vsel %vm116_vm4, %v123_v55, %v125_v60  ;;  %v122_v8 = vsel %vm116_vm4, %v119_v63, %v121_v1  ;;  %v979_v54 = vld [vmem:[#allocation2 + $0x10] ss:$8 sps:$4 sm:$0xff]   ;;  %v984_v55 = vld [vmem:[#allocation2 + $0x24] ss:$8 sps:$4 sm:$0xff]   ;;  %v987_v57 = vld [vmem:[#allocation2 + $0x34] ss:$8 sps:$4 sm:$0xff]  }
  0xcf   :  { %v130_v3 = vsel %vm116_vm4, %v127_v56, %v129_v61  ;;  %v1276_v6 = vmul.u32.u64.low %v131_v62, %v126_v2  ;;  %v1277_v7 = vmul.u32.u64.high %v131_v62, %v126_v2, %v1276_v6  ;;  %v138_v10 = vmul.u32 %v131_v62, %v122_v8  ;;  %v982_v56 = vld [vmem:[#allocation2 + $0x20] ss:$8 sps:$4 sm:$0xff]   ;;  %v985_v58 = vld [vmem:[#allocation2 + $0x30] ss:$8 sps:$4 sm:$0xff]   ;;  %v990_v59 = vld [vmem:[#allocation2 + $0x44] ss:$8 sps:$4 sm:$0xff]  }
  0xd0   :  { %v1273_v4 = vmul.u32.u64.low %v131_v62, %v130_v3  ;;  %v1274_v5 = vmul.u32.u64.high %v131_v62, %v130_v3, %v1273_v4  ;;  %v988_v60 = vld [vmem:[#allocation2 + $0x40] ss:$8 sps:$4 sm:$0xff]   ;;  %v993_v61 = vld [vmem:[#allocation2 + $0x54] ss:$8 sps:$4 sm:$0xff]   ;;  %v991_v63 = vld [vmem:[#allocation2 + $0x50] ss:$8 sps:$4 sm:$0xff]  }
  0xd1   :  { %v141_v9 = vadd.s32 1, %v1277_v7  ;;  %v996_v1 = vld [vmem:[#allocation2 + $0x64] ss:$8 sps:$4 sm:$0xff]   ;;  %v994_v3 = vld [vmem:[#allocation2 + $0x60] ss:$8 sps:$4 sm:$0xff]  }
  0xd2   :  { %vm140_vm5 = vc.u32 %v1274_v5, %v1276_v6  ;;  %v139_v23 = vadd.s32 %v1276_v6, %v1274_v5  ;;  %v999_v4 = vld [vmem:[#allocation2 + $0x74] ss:$8 sps:$4 sm:$0xff]   ;;  %v997_v6 = vld [vmem:[#allocation2 + $0x70] ss:$8 sps:$4 sm:$0xff]  }
  0xd3   :  { %v142_v11 = vsel %vm140_vm5, %v141_v9, %v1277_v7  ;;  %v1000_v9 = vld [vmem:[#allocation7 + $0x4] ss:$8 sps:$4 sm:$0xff]  }
  0xd4   :  { %v143_v12 = vadd.s32 %v142_v11, %v138_v10  ;;  %v1002_v10 = vld [vmem:[#allocation7] ss:$8 sps:$4 sm:$0xff]   ;;  %v1003_v11 = vld [vmem:[#allocation7 + $0x14] ss:$8 sps:$4 sm:$0xff]   ;;  %800 = vmatprep.subr.bf16.mxu0 %v1000_v9 }
  0xd5   :  { %801 = vmatpush1.bf16.msra.mxu0 %v1002_v10 }
  0xd6   :  { %v144_v13 = vadd.s32 536870912, %v143_v12  ;;  %802 = vmatprep.subr.bf16.mxu0 %v1003_v11 }
  0xd8   :  { %v145_v14 = vshrl.u32 %v144_v13, 30  ;;  %v1006_v13 = vld [vmem:[#allocation7 + $0x24] ss:$8 sps:$4 sm:$0xff]  }
  0xda   :  { %v146_v15 = vshll.u32 %v145_v14, 30  ;;  %v169_v36 = vsub.s32 4, %v145_v14 }
  0xdc   :  { %v147_v16 = vsub.s32 %v143_v12, %v146_v15  ;;  %v170_v39 = vsel %vm85_vm7, %v169_v36, %v145_v14  ;;  %v1005_v12 = vld [vmem:[#allocation7 + $0x10] ss:$8 sps:$4 sm:$0xff]   ;;  %v1008_v14 = vld [vmem:[#allocation7 + $0x20] ss:$8 sps:$4 sm:$0xff]   ;;  %v1009_v15 = vld [vmem:[#allocation7 + $0x34] ss:$8 sps:$4 sm:$0xff]  }
  0xdd   :  { %v172_v41 = vsel %vm84_vm8, 0, %v170_v39  ;;  %803 = vmatpush1.bf16.msra.mxu0 %v1005_v12  ;;  %v1039_v36 = vld [vmem:[#allocation7 + $0xd4] ss:$8 sps:$4 sm:$0xff]   ;;  %v1044_v39 = vld [vmem:[#allocation7 + $0xe0] ss:$8 sps:$4 sm:$0xff]  }
  0xde   :  { %v149_v17 = vsub.s32 0, %v147_v16  ;;  %v279_v42 = vadd.s32 3, %v172_v41  ;;  %v176_v62 = vand.u32 3, %v172_v41  ;;  %804 = vmatprep.subr.bf16.mxu0 %v1006_v13  ;;  %v1047_v41 = vld [vmem:[#allocation7 + $0xf0] ss:$8 sps:$4 sm:$0xff]  }
  0xe0   :  { %v861_v18 = vmin.u32 %v149_v17, %v147_v16  ;;  %v280_v43 = vand.u32 3, %v279_v42  ;;  %vm178_vm13 = vcmp.eq.s32.totalorder %v176_v62, 0  ;;  %vm181_vm14 = vcmp.eq.s32.totalorder %v176_v62, 2  ;;  %v1014_v17 = vld [vmem:[#allocation7 + $0x40] ss:$8 sps:$4 sm:$0xff]  }
  0xe1   :  { %vm177_vm15 = vcmp.lt.s32.totalorder %v176_v62, 2  ;;  %805 = vmatpush1.bf16.msra.mxu0 %v1008_v14 }
  0xe2   :  { %v151_v19 = vclz %v861_v18  ;;  %vm285_vm9 = vcmp.eq.s32.totalorder %v280_v43, 2  ;;  %vm282_vm10 = vcmp.eq.s32.totalorder %v280_v43, 0  ;;  %vm281_vm11 = vcmp.lt.s32.totalorder %v280_v43, 2  ;;  %806 = vmatprep.subr.bf16.mxu0 %v1009_v15  ;;  %v1015_v18 = vld [vmem:[#allocation7 + $0x54] ss:$8 sps:$4 sm:$0xff]  }
  0xe4   :  { %v862_v20 = vadd.s32 4294967294, %v151_v19  ;;  %v1017_v19 = vld [vmem:[#allocation7 + $0x50] ss:$8 sps:$4 sm:$0xff]  }
  0xe6   :  { %vm863_vm6 = vcmp.lt.s32.totalorder %v862_v20, 0 }
  0xe7   :  { %v154_v22 = vsel %vm863_vm6, 0, %v862_v20  ;;  %v1018_v20 = vld [vmem:[#allocation7 + $0x64] ss:$8 sps:$4 sm:$0xff]  }
  0xe8   :  { %v155_v24 = vsub.s32 32, %v154_v22  ;;  %v159_v25 = vsub.s32 4294967266, %v154_v22  ;;  %v156_v27 = vshll.u32 %v147_v16, %v154_v22  ;;  %v1011_v16 = vld [vmem:[#allocation7 + $0x30] ss:$8 sps:$4 sm:$0xff]   ;;  %v1020_v22 = vld [vmem:[#allocation7 + $0x60] ss:$8 sps:$4 sm:$0xff]  }
  0xe9   :  { %807 = vmatpush1.bf16.msra.mxu0 %v1011_v16 }
  0xea   :  { %v157_v28 = vshrl.u32 %v139_v23, %v155_v24  ;;  %v160_v29 = vadd.s32 127, %v159_v25  ;;  %v1021_v23 = vld [vmem:[#allocation7 + $0x74] ss:$8 sps:$4 sm:$0xff]   ;;  %v1023_v24 = vld [vmem:[#allocation7 + $0x70] ss:$8 sps:$4 sm:$0xff]  }
  0xeb   :  { %v1024_v25 = vld [vmem:[#allocation7 + $0x84] ss:$8 sps:$4 sm:$0xff]  }
  0xec   :  { %v158_v30 = vor.u32 %v157_v28, %v156_v27  ;;  %v161_v31 = vshll.u32 %v160_v29, 23  ;;  %v1026_v27 = vld [vmem:[#allocation7 + $0x80] ss:$8 sps:$4 sm:$0xff]   ;;  %v1027_v28 = vld [vmem:[#allocation7 + $0x94] ss:$8 sps:$4 sm:$0xff]  }
  0xed   :  { %v1029_v29 = vld [vmem:[#allocation7 + $0x90] ss:$8 sps:$4 sm:$0xff]  }
  0xee   :  { %v162_v32 = vor.u32 4788187, %v161_v31  ;;  %v165_v34 = vcvt.s32.f32 %v158_v30  ;;  %v1030_v30 = vld [vmem:[#allocation7 + $0xa4] ss:$8 sps:$4 sm:$0xff]   ;;  %v1032_v31 = vld [vmem:[#allocation7 + $0xa0] ss:$8 sps:$4 sm:$0xff]  }
  0xf0   :  { %v163_v33 = vand.u32 2147483647, %v162_v32  ;;  %v1033_v32 = vld [vmem:[#allocation7 + $0xb4] ss:$8 sps:$4 sm:$0xff]  }
  0xf2   :  { %v166_v35 = vmul.f32 %v165_v34, %v163_v33  ;;  %v1035_v33 = vld [vmem:[#allocation7 + $0xb0] ss:$8 sps:$4 sm:$0xff]   ;;  %v1036_v34 = vld [vmem:[#allocation7 + $0xc4] ss:$8 sps:$4 sm:$0xff]  }
  0xf4   :  { %v167_v37 = vxor.u32 2147483648, %v166_v35 }
  0xf6   :  { %v168_v38 = vsel %vm85_vm7, %v167_v37, %v166_v35  ;;  %v1038_v35 = vld [vmem:[#allocation7 + $0xc0] ss:$8 sps:$4 sm:$0xff]   ;;  %v1041_v37 = vld [vmem:[#allocation7 + $0xd0] ss:$8 sps:$4 sm:$0xff]  }
  0xf7   :  { %v171_v40 = vsel %vm84_vm8, %v1267_v21, %v168_v38  ;;  %v1012_v21 = vld [vmem:[#allocation7 + $0x44] ss:$8 sps:$4 sm:$0xff]  }
  0xf8   :  { %1048 = vcosq.f32 %v171_v40  ;;  %808 = vmatprep.subr.bf16.mxu0 %v1012_v21  ;;  %v1042_v38 = vld [vmem:[#allocation7 + $0xe4] ss:$8 sps:$4 sm:$0xff]  }
  0xf9   :  { %1050 = vsinq.f32 %v171_v40  ;;  %809 = vmatpush1.bf16.msra.mxu0 %v1014_v17  ;;  %v1045_v40 = vld [vmem:[#allocation7 + $0xf4] ss:$8 sps:$4 sm:$0xff]  }
  0xfa   :  { %810 = vmatprep.subr.bf16.mxu0 %v1015_v18 }
  0xfd   :  { %811 = vmatpush1.bf16.msra.mxu0 %v1017_v19 }
  0xfe   :  { %812 = vmatprep.subr.bf16.mxu0 %v1018_v20 }
 0x101   :  { %813 = vmatpush1.bf16.msra.mxu0 %v1020_v22 }
 0x102   :  { %v1049_v44 = vpop.eup %1048  ;;  %814 = vmatprep.subr.bf16.mxu0 %v1021_v23 }
 0x103   :  { %v1051_v45 = vpop.eup %1050  ;;  %v182_v46 = vxor.u32 2147483648, %v1049_v44 }
 0x104   :  { %v179_v47 = vxor.u32 2147483648, %v1051_v45 }
 0x105   :  { %v287_v48 = vsel %vm285_vm9, %v182_v46, %v1051_v45  ;;  %v183_v2 = vsel %vm181_vm14, %v182_v46, %v1051_v45  ;;  %815 = vmatpush1.bf16.msra.mxu0 %v1023_v24  ;;  %v568_v46 = vlaneseq }
 0x106   :  { %v284_v49 = vsel %vm282_vm10, %v1049_v44, %v179_v47  ;;  %816 = vmatprep.subr.bf16.mxu0 %v1024_v25 }
 0x107   :  { %v288_v26 = vsel %vm281_vm11, %v284_v49, %v287_v48  ;;  %v566_v49 = vld [vmem:[%s1315_s4] sm:$0x3] }
 0x108   :  { %v289_v51 = vsel %vm175_vm12, nan, %v288_v26 }
 0x109   :  { %v307_v52 = vpack.c.bf16 %v289_v51, %v289_v51  ;;  %817 = vmatpush1.bf16.msra.mxu0 %v1026_v27 }
 0x10a   :  { %818 = vmatprep.subr.bf16.mxu0 %v1027_v28 }
 0x10b   :  { %437 = vmatmul.mubr.bf16.vlgmr.msra.gmra.mrb[0].mxu1 %v307_v52 }
 0x10c   :  { %526 = vmatpush1.bf16.msra.mxu1 %v976_v50  ;;  %557 = vmatprep.mubr.bf16.mxu1 %v1159_v0  ;;  %v180_v0 = vsel %vm178_vm13, %v1049_v44, %v179_v47  ;;  %v569_v47 = vshrl.u32 %v568_v46, 7 }
 0x10d   :  { %527 = vmatprep.subr.bf16.mxu1 %v981_v53  ;;  %v184_v5 = vsel %vm177_vm15, %v180_v0, %v183_v2  ;;  %819 = vmatpush1.bf16.msra.mxu0 %v1029_v29 }
 0x10e   :  { %v185_v7 = vsel %vm175_vm12, nan, %v184_v5  ;;  %820 = vmatprep.subr.bf16.mxu0 %v1030_v30  ;;  %v570_v48 = vsub.s32 0, %v569_v47  ;;  %v574_v26 = vsub.s32 1, %v569_v47 }
 0x10f   :  { %v290_v8 = vpack.c.bf16 %v185_v7, %v185_v7 }
 0x110   :  { %528 = vmatpush1.bf16.msra.mxu1 %v979_v54  ;;  %v571_v50 = vrot.slane %v566_v49, %v570_v48  ;;  %v575_v52 = vrot.slane %v566_v49, %v574_v26 }
 0x111   :  { %529 = vmatprep.subr.bf16.mxu1 %v984_v55  ;;  %821 = vmatpush1.bf16.msra.mxu0 %v1032_v31 }
 0x112   :  { %822 = vmatprep.subr.bf16.mxu0 %v1033_v32 }
 0x114   :  { %530 = vmatpush1.bf16.msra.mxu1 %v982_v56 }
 0x115   :  { %531 = vmatprep.subr.bf16.mxu1 %v987_v57  ;;  %823 = vmatpush1.bf16.msra.mxu0 %v1035_v33 }
 0x116   :  { %824 = vmatprep.subr.bf16.mxu0 %v1036_v34 }
 0x118   :  { %532 = vmatpush1.bf16.msra.mxu1 %v985_v58 }
 0x119   :  { %533 = vmatprep.subr.bf16.mxu1 %v990_v59  ;;  %825 = vmatpush1.bf16.msra.mxu0 %v1038_v35 }
 0x11a   :  { %826 = vmatprep.subr.bf16.mxu0 %v1039_v36 }
 0x11c   :  { %534 = vmatpush1.bf16.msra.mxu1 %v988_v60 }
 0x11d   :  { %535 = vmatprep.subr.bf16.mxu1 %v993_v61  ;;  %827 = vmatpush1.bf16.msra.mxu0 %v1041_v37 }
 0x11e   :  { %828 = vmatprep.subr.bf16.mxu0 %v1042_v38 }
 0x120   :  { %536 = vmatpush1.bf16.msra.mxu1 %v991_v63 }
 0x121   :  { %537 = vmatprep.subr.bf16.mxu1 %v996_v1  ;;  %829 = vmatpush1.bf16.msra.mxu0 %v1044_v39 }
 0x122   :  { %830 = vmatprep.subr.bf16.mxu0 %v1045_v40 }
 0x124   :  { %538 = vmatpush1.bf16.msra.mxu1 %v994_v3 }
 0x125   :  { %539 = vmatprep.subr.bf16.mxu1 %v999_v4  ;;  %831 = vmatpush1.bf16.msra.mxu0 %v1047_v41 }
 0x128   :  { %540 = vmatpush1.bf16.msra.mxu1 %v997_v6 }
 0x12b   :  { %558 = vmatmul.mubr.bf16.vlgmr.msra.gmra.mrb[4].mxu1 %v290_v8  ;;  %v628_v8 = vld [vmem:[%s1317_s6] sm:$0x3] }
 0x12c   :  { %v633_v9 = vrot.slane %v628_v8, %v570_v48  ;;  %v637_v10 = vrot.slane %v628_v8, %v574_v26 }
 0x1de   :  { %v438_v42 = vpop.f32.mrb[0].mxu1 }
 0x1df   :  { %v440_v43 = vpop.f32.mrb[1].mxu1 }
 0x1e0   :  { %v442_v44 = vpop.f32.mrb[2].mxu1 }
 0x1e1   :  { %v443_v45 = vpop.f32.mrb[3].mxu1 }
 0x1fe   :  { %v559_v51 = vpop.f32.mrb[4].mxu1 }
 0x1ff   :  { %v560_v53 = vadd.f32 %v559_v51, %v438_v42  ;;  %v561_v54 = vpop.f32.mrb[5].mxu1 }
 0x200   :  { %v562_v55 = vadd.f32 %v561_v54, %v440_v43  ;;  %v563_v56 = vpop.f32.mrb[6].mxu1 }
 0x201   :  { %v578_v57 = vadd.f32 %v571_v50, %v560_v53  ;;  %v564_v58 = vpop.f32.mrb[7].mxu1 }
 0x202   :  { %v579_v59 = vadd.f32 %v575_v52, %v562_v55 }
 0x203   :  { %v900_v60 = vmul.f32 -1.442695, %v578_v57 }
 0x204   :  { %v901_v61 = vmul.f32 -1.442695, %v579_v59 }
 0x205   :  { %1052 = vpow2.f32 %v900_v60 }
 0x206   :  { %1054 = vpow2.f32 %v901_v61 }
 0x20f   :  { %v1053_v62 = vpop.eup %1052 }
 0x210   :  { %v1055_v63 = vpop.eup %1054  ;;  %v586_v1 = vadd.f32 1.0, %v1053_v62 }
 0x211   :  { %v587_v0 = vadd.f32 1.0, %v1055_v63 }
 0x212   :  { %1056 = vrcp.f32 %v586_v1 }
 0x213   :  { %1058 = vrcp.f32 %v587_v0 }
 0x21c   :  { %v1057_v2 = vpop.eup %1056 }
 0x21d   :  { %v1059_v3 = vpop.eup %1058  ;;  %v592_v4 = vmul.f32 %v1057_v2, %v578_v57 }
 0x21e   :  { %v593_v5 = vmul.f32 %v1059_v3, %v579_v59 }
 0x21f   :  { %v594_v7 = vpack.c.bf16 %v592_v4, %v592_v4 }
 0x220   :  { %v595_v6 = vpack.c.bf16 %v593_v5, %v593_v5 }
 0x222   :  { %832 = vmatprep.mubr.bf16.mxu0 %v595_v6 }
 0x223   :  { %833 = vmatmul.mubr.bf16.vlgmr.msra.gmra.mrb[0].mxu0 %v594_v7 }
 0x2f6   :  { %v834_v11 = vpop.f32.mrb[0].mxu0 }
 0x2f7   :  { %v835_v12 = vadd.f32 %v834_v11, %v633_v9  ;;  %v836_v13 = vpop.f32.mrb[1].mxu0 }
 0x2f8   :  { %v837_v14 = vadd.f32 %v836_v13, %v637_v10  ;;  %v838_v15 = vpop.f32.mrb[2].mxu0 }
 0x2f9   :  { %841 = vst [vmem:[#allocation8] sm:$0xff] %v835_v12  ;;  %v839_v16 = vpop.f32.mrb[3].mxu0 }
 0x2fa   :  { %842 = vst [vmem:[#allocation8 + $0x8] sm:$0xff] %v837_v14 }
 0x2fb   :  { %1137 = shalt.err (!%p1134_p0)
}
 0x2fc   :  { %s1138_s22 = scalar_lea.hbm %s1318_s7, 256 }
 0x2fd   :  { %p1139_p1 = scmp.ne.s32.totalorder %s1318_s7, %s1138_s22  ;;  %p1142_p2 = scmp.lt.u32.totalorder %s1138_s22, %s1318_s7 }
 0x2ff   :  { %p1144_p3 = pnand %p1142_p2, %p1139_p1 }
 0x301   :  { %1147 = shalt.err (!%p1144_p3)
}
 0x302   :  { %852 = dma.vmem_to_hbm [thread:$0]  %s850_s19, 256, %s1318_s7, [#allocation4]  }
 0x303   :  { %1152 = dma.done.wait [#allocation4], 256  }
 0x304   :  { %1153 = vsyncadd [#allocation4], 4294967040 }
 0x305   :  { %856 = vsyncpa [#allocation3], 1 }
 0x306   :  { %857 = vsyncpa [#allocation6], 1 }
 0x307   :  { %858 = vsyncpa [#allocation4], 1 }

</bundles_post_ra>
